<compile_context>
chip_gen: v7x
topology: tpu7x:2x2x1
jax: 0.10.0
libtpu: 0.0.40
codegen_flags: <defaults>
</compile_context>

<pallas_src>
import jax
import jax.numpy as jnp
from jax.experimental import pallas as pl
from jax.experimental.pallas import tpu as pltpu

# ----- model sizes (small, consistent with the module's forward) -------------
VOCAB = 32     # vocab_size
EMBED = 64     # embed_dim (only used to build the folded table G)
HIDDEN = 128   # rnn_hidden_dim
BATCH = 8      # batch_size
SEQ = 8        # tokens processed per kernel launch in the sequence demo
V_PAD = 128    # lane-dense padded logits width (slice back to VOCAB outside)


# ----- Pallas kernel: T fused LSTM steps + output projection ------------------
def lstm_seq_kernel(x_ref,              # (T, B)      int32, SMEM (scalar prefetch)
                    h0_ref, c0_ref,     # (B, H)      f32
                    g_ref,              # (V, 4H)     bf16  == emb_table @ W_ih^T
                    whh_ref,            # (H, 4H)     bf16
                    b_ref,              # (1, 4H)     f32   == b_ih + b_hh
                    wfc_ref,            # (H, V_PAD)  bf16
                    bfc_ref,            # (1, V_PAD)  f32
                    logits_ref,         # (B, V_PAD)  f32 (time dim squeezed)
                    h_out_ref,          # (B, H)      f32 (resident carry / final h)
                    c_out_ref):         # (B, H)      f32 (resident carry / final c)
    t = pl.program_id(0)
    B, V, H = BATCH, VOCAB, HIDDEN

    # Seed the resident carries from the initial state on the first step.
    @pl.when(t == 0)
    def _():
        h_out_ref[...] = h0_ref[...]
        c_out_ref[...] = c0_ref[...]

    h = h_out_ref[...]
    c = c_out_ref[...]

    # Build a one-hot (B, V) for this step's token ids from SMEM scalars; the
    # embedding + input projection then becomes one tiny MXU matmul against G.
    row = jax.lax.broadcasted_iota(jnp.int32, (B, V), 0)
    col = jax.lax.broadcasted_iota(jnp.int32, (B, V), 1)
    onehot = jnp.zeros((B, V), jnp.float32)
    for b in range(B):                       # B is small & static -> unrolled
        tok = x_ref[t, b]
        onehot = jnp.where((row == b) & (col == tok), 1.0, onehot)

    # gates = onehot @ G + h @ W_hh^T + (b_ih + b_hh)   -> (B, 4H), order [i,f,g,o]
    gates = (jnp.dot(onehot.astype(jnp.bfloat16), g_ref[...],
                     preferred_element_type=jnp.float32)
             + jnp.dot(h.astype(jnp.bfloat16), whh_ref[...],
                       preferred_element_type=jnp.float32)
             + b_ref[...])

    i_g = jax.nn.sigmoid(gates[:, 0 * H:1 * H])
    f_g = jax.nn.sigmoid(gates[:, 1 * H:2 * H])
    g_g = jnp.tanh(gates[:, 2 * H:3 * H])
    o_g = jax.nn.sigmoid(gates[:, 3 * H:4 * H])

    c_new = f_g * c + i_g * g_g
    h_new = o_g * jnp.tanh(c_new)

    logits = jnp.dot(h_new.astype(jnp.bfloat16), wfc_ref[...],
                     preferred_element_type=jnp.float32) + bfc_ref[...]

    logits_ref[...] = logits
    h_out_ref[...] = h_new
    c_out_ref[...] = c_new


# ----- wrappers ----------------------------------------------------------------
def rnn_forward_seq(x_seq, hidden, cell, params):
    """Applies the module's forward to T consecutive tokens in ONE pallas_call.

    x_seq:  (T, B) int32 token ids
    hidden: (1, B, H) float32
    cell:   (1, B, H) float32
    returns (logits (T, B, V), hidden (1, B, H), cell (1, B, H))
    """
    g_emb, w_hh_t, b_gates, w_fc_t, b_fc = params
    T, B = x_seq.shape
    H = HIDDEN

    out_shapes = (
        jax.ShapeDtypeStruct((T, B, V_PAD), jnp.float32),
        jax.ShapeDtypeStruct((B, H), jnp.float32),
        jax.ShapeDtypeStruct((B, H), jnp.float32),
    )

    logits_pad, h_new, c_new = pl.pallas_call(
        lstm_seq_kernel,
        out_shape=out_shapes,
        grid_spec=pltpu.PrefetchScalarGridSpec(
            num_scalar_prefetch=1,            # x_seq lands in SMEM
            grid=(T,),
            in_specs=[
                pl.BlockSpec((B, H), lambda t, x: (0, 0)),                # h0
                pl.BlockSpec((B, H), lambda t, x: (0, 0)),                # c0
                pl.BlockSpec((VOCAB, 4 * H), lambda t, x: (0, 0)),        # G (resident)
                pl.BlockSpec((H, 4 * H), lambda t, x: (0, 0)),            # W_hh^T (resident)
                pl.BlockSpec((1, 4 * H), lambda t, x: (0, 0)),            # bias (resident)
                pl.BlockSpec((H, V_PAD), lambda t, x: (0, 0)),            # W_fc^T (resident)
                pl.BlockSpec((1, V_PAD), lambda t, x: (0, 0)),            # b_fc (resident)
            ],
            out_specs=[
                pl.BlockSpec((None, B, V_PAD), lambda t, x: (t, 0, 0)),   # per-step logits
                pl.BlockSpec((B, H), lambda t, x: (0, 0)),                # final h (carry)
                pl.BlockSpec((B, H), lambda t, x: (0, 0)),                # final c (carry)
            ],
        ),
        compiler_params=pltpu.CompilerParams(
            dimension_semantics=("arbitrary",)),   # time axis carries h/c dependency
    )(x_seq, hidden[0], cell[0], g_emb, w_hh_t, b_gates, w_fc_t, b_fc)

    logits = logits_pad[:, :, :VOCAB]              # drop lane padding
    return logits, h_new[None, ...], c_new[None, ...]


def rnn_forward(x, hidden, cell, params):
    """Exact signature of RNN.forward(x, hidden, cell) — a single timestep."""
    logits, h_new, c_new = rnn_forward_seq(x[None, :], hidden, cell, params)
    return logits[0], h_new, c_new


# ----- parameters ---------------------------------------------------------------
def init_params(key):
    """Synthetic parameters with PyTorch-default-style scaling, pre-packed for TPU."""
    keys = jax.random.split(key, 7)
    k_lstm = 1.0 / jnp.sqrt(HIDDEN)
    k_fc = 1.0 / jnp.sqrt(HIDDEN)

    emb_table = jax.random.normal(keys[0], (VOCAB, EMBED), jnp.float32)
    w_ih = jax.random.uniform(keys[1], (4 * HIDDEN, EMBED), jnp.float32, -k_lstm, k_lstm)
    w_hh = jax.random.uniform(keys[2], (4 * HIDDEN, HIDDEN), jnp.float32, -k_lstm, k_lstm)
    b_ih = jax.random.uniform(keys[3], (4 * HIDDEN,), jnp.float32, -k_lstm, k_lstm)
    b_hh = jax.random.uniform(keys[4], (4 * HIDDEN,), jnp.float32, -k_lstm, k_lstm)
    w_fc = jax.random.uniform(keys[5], (VOCAB, HIDDEN), jnp.float32, -k_fc, k_fc)
    b_fc = jax.random.uniform(keys[6], (VOCAB,), jnp.float32, -k_fc, k_fc)

    # Fold embedding into the input projection: G[v] = emb_table[v] @ W_ih^T  (V, 4H)
    g_emb = jnp.dot(emb_table, w_ih.T).astype(jnp.bfloat16)
    w_hh_t = w_hh.T.astype(jnp.bfloat16)                       # (H, 4H) bf16
    b_gates = (b_ih + b_hh)[None, :]                           # (1, 4H) f32

    # Lane-dense fc: pad V=32 -> 128 lanes so the kernel does unmasked stores.
    w_fc_pad = jnp.zeros((HIDDEN, V_PAD), jnp.float32).at[:, :VOCAB].set(w_fc.T)
    w_fc_pad = w_fc_pad.astype(jnp.bfloat16)                   # (H, V_PAD) bf16
    b_fc_pad = jnp.zeros((1, V_PAD), jnp.float32).at[0, :VOCAB].set(b_fc)

    return (g_emb, w_hh_t, b_gates, w_fc_pad, b_fc_pad)


# ----- pure-JAX reference (same quantized math) ----------------------------------
def _reference_seq(x_seq, hidden, cell, params):
    g_emb, w_hh_t, b_gates, w_fc_t, b_fc = params
    H = HIDDEN
    h, c = hidden[0], cell[0]
    outs = []
    for t in range(x_seq.shape[0]):
        gx = g_emb[x_seq[t]].astype(jnp.float32)
        gates = (gx
                 + jnp.dot(h.astype(jnp.bfloat16), w_hh_t,
                           preferred_element_type=jnp.float32)
                 + b_gates)
        i = jax.nn.sigmoid(gates[:, :H])
        f = jax.nn.sigmoid(gates[:, H:2 * H])
        g = jnp.tanh(gates[:, 2 * H:3 * H])
        o = jax.nn.sigmoid(gates[:, 3 * H:])
        c = f * c + i * g
        h = o * jnp.tanh(c)
        logits = jnp.dot(h.astype(jnp.bfloat16), w_fc_t,
                         preferred_element_type=jnp.float32) + b_fc
        outs.append(logits[:, :VOCAB])
    return jnp.stack(outs, axis=0), h[None], c[None]


if __name__ == "__main__":
    key = jax.random.PRNGKey(0)
    k_param, k_x, k_h, k_c = jax.random.split(key, 4)

    params = init_params(k_param)
    x_seq = jax.random.randint(k_x, (SEQ, BATCH), 0, VOCAB, dtype=jnp.int32)
    # init_hidden() is zeros; use small random state to exercise the recurrence
    hidden = 0.1 * jax.random.normal(k_h, (1, BATCH, HIDDEN), jnp.float32)
    cell = 0.1 * jax.random.normal(k_c, (1, BATCH, HIDDEN), jnp.float32)

    # --- single-step call: exact original module signature/semantics ---
    logits1, h1, c1 = rnn_forward(x_seq[0], hidden, cell, params)
    jax.block_until_ready((logits1, h1, c1))
    ref_l1, ref_h1, ref_c1 = _reference_seq(x_seq[:1], hidden, cell, params)
    assert logits1.shape == (BATCH, VOCAB)
    assert h1.shape == (1, BATCH, HIDDEN) and c1.shape == (1, BATCH, HIDDEN)
    assert jnp.allclose(logits1, ref_l1[0], atol=5e-3, rtol=1e-3)
    assert jnp.allclose(h1, ref_h1, atol=5e-3, rtol=1e-3)
    assert jnp.allclose(c1, ref_c1, atol=5e-3, rtol=1e-3)

    # --- T fused steps in one pallas_call (amortizes weight DMA / launch overhead) ---
    logitsT, hT, cT = rnn_forward_seq(x_seq, hidden, cell, params)
    jax.block_until_ready((logitsT, hT, cT))
    ref_lT, ref_hT, ref_cT = _reference_seq(x_seq, hidden, cell, params)
    assert logitsT.shape == (SEQ, BATCH, VOCAB)
    assert jnp.allclose(logitsT, ref_lT, atol=5e-3, rtol=1e-3)
    assert jnp.allclose(hT, ref_hT, atol=5e-3, rtol=1e-3)
    assert jnp.allclose(cT, ref_cT, atol=5e-3, rtol=1e-3)

    print("KERNEL_OK")
</pallas_src>

<mosaic_0001>
module attributes {stable_mosaic.version = 11 : i64} {
  func.func @lstm_seq_kernel(%arg0: i32, %arg1: memref<1x8xi32, #tpu.memory_space<smem>>, %arg2: memref<8x128xf32, #tpu.memory_space<vmem>>, %arg3: memref<8x128xf32, #tpu.memory_space<vmem>>, %arg4: memref<32x512xbf16, #tpu.memory_space<vmem>>, %arg5: memref<128x512xbf16, #tpu.memory_space<vmem>>, %arg6: memref<1x512xf32, #tpu.memory_space<vmem>>, %arg7: memref<128x128xbf16, #tpu.memory_space<vmem>>, %arg8: memref<1x128xf32, #tpu.memory_space<vmem>>, %arg9: memref<1x8x128xf32, #tpu.memory_space<vmem>>, %arg10: memref<8x128xf32, #tpu.memory_space<vmem>>, %arg11: memref<8x128xf32, #tpu.memory_space<vmem>>) attributes {dimension_semantics = [#tpu.dimension_semantics<arbitrary>], iteration_bounds = array<i64: 1>, scalar_prefetch = 1 : i64, scratch_operands = 0 : i64, tpu.core_type = #tpu.core_type<tc>, window_params = [{pipeline_mode = #tpu.pipeline_mode<synchronous>, transform_indices = @transform_0, window_bounds = array<i64: 8, 128>}, {pipeline_mode = #tpu.pipeline_mode<synchronous>, transform_indices = @transform_1, window_bounds = array<i64: 8, 128>}, {pipeline_mode = #tpu.pipeline_mode<synchronous>, transform_indices = @transform_2, window_bounds = array<i64: 32, 512>}, {pipeline_mode = #tpu.pipeline_mode<synchronous>, transform_indices = @transform_3, window_bounds = array<i64: 128, 512>}, {pipeline_mode = #tpu.pipeline_mode<synchronous>, transform_indices = @transform_4, window_bounds = array<i64: 1, 512>}, {pipeline_mode = #tpu.pipeline_mode<synchronous>, transform_indices = @transform_5, window_bounds = array<i64: 128, 128>}, {pipeline_mode = #tpu.pipeline_mode<synchronous>, transform_indices = @transform_6, window_bounds = array<i64: 1, 128>}, {transform_indices = @transform_7, window_bounds = array<i64: 1, 8, 128>}, {pipeline_mode = #tpu.pipeline_mode<synchronous>, transform_indices = @transform_8, window_bounds = array<i64: 8, 128>}, {pipeline_mode = #tpu.pipeline_mode<synchronous>, transform_indices = @transform_9, window_bounds = array<i64: 8, 128>}]} {
    %c0_i32 = arith.constant 0 : i32
    %0 = arith.cmpi eq, %arg0, %c0_i32 : i32
    %1 = arith.extui %0 : i1 to i32
    %c0_i32_0 = arith.constant 0 : i32
    %2 = arith.cmpi ne, %1, %c0_i32_0 : i32
    scf.if %2 {
      %c0_37 = arith.constant 0 : index
      %c0_38 = arith.constant 0 : index
      %126 = vector.load %arg2[%c0_37, %c0_38] : memref<8x128xf32, #tpu.memory_space<vmem>>, vector<8x128xf32>
      %c0_39 = arith.constant 0 : index
      %c0_40 = arith.constant 0 : index
      %127 = vector.load %arg10[%c0_39, %c0_40] : memref<8x128xf32, #tpu.memory_space<vmem>>, vector<8x128xf32>
      tpu.vector_store %arg10[%c0_39, %c0_40], %126 {strides = array<i32>} : memref<8x128xf32, #tpu.memory_space<vmem>>, vector<8x128xf32>,
      %c0_41 = arith.constant 0 : index
      %c0_42 = arith.constant 0 : index
      %128 = vector.load %arg3[%c0_41, %c0_42] : memref<8x128xf32, #tpu.memory_space<vmem>>, vector<8x128xf32>
      %c0_43 = arith.constant 0 : index
      %c0_44 = arith.constant 0 : index
      %129 = vector.load %arg11[%c0_43, %c0_44] : memref<8x128xf32, #tpu.memory_space<vmem>>, vector<8x128xf32>
      tpu.vector_store %arg11[%c0_43, %c0_44], %128 {strides = array<i32>} : memref<8x128xf32, #tpu.memory_space<vmem>>, vector<8x128xf32>,
    } else {
    }
    %c0 = arith.constant 0 : index
    %c0_1 = arith.constant 0 : index
    %3 = vector.load %arg10[%c0, %c0_1] : memref<8x128xf32, #tpu.memory_space<vmem>>, vector<8x128xf32>
    %c0_2 = arith.constant 0 : index
    %c0_3 = arith.constant 0 : index
    %4 = vector.load %arg11[%c0_2, %c0_3] : memref<8x128xf32, #tpu.memory_space<vmem>>, vector<8x128xf32>
    %5 = tpu.iota {dimensions = array<i32: 0>} : vector<8x32xi32>
    %6 = tpu.iota {dimensions = array<i32: 1>} : vector<8x32xi32>
    %cst = arith.constant 0.000000e+00 : f32
    %7 = vector.broadcast %cst : f32 to vector<8x32xf32>
    %8 = arith.index_cast %arg0 : i32 to index
    %c0_4 = arith.constant 0 : index
    %9 = memref.load %arg1[%8, %c0_4] : memref<1x8xi32, #tpu.memory_space<smem>>
    %c0_i32_5 = arith.constant 0 : i32
    %10 = vector.broadcast %c0_i32_5 : i32 to vector<8x32xi32>
    %11 = arith.cmpi eq, %5, %10 : vector<8x32xi32>
    %12 = vector.broadcast %9 : i32 to vector<8x32xi32>
    %13 = arith.cmpi eq, %6, %12 : vector<8x32xi32>
    %14 = arith.andi %11, %13 : vector<8x32xi1>
    %cst_6 = arith.constant 1.000000e+00 : f32
    %15 = vector.broadcast %cst_6 : f32 to vector<8x32xf32>
    %16 = arith.select %14, %15, %7 : vector<8x32xi1>, vector<8x32xf32>
    %17 = arith.index_cast %arg0 : i32 to index
    %c1 = arith.constant 1 : index
    %18 = memref.load %arg1[%17, %c1] : memref<1x8xi32, #tpu.memory_space<smem>>
    %c1_i32 = arith.constant 1 : i32
    %19 = vector.broadcast %c1_i32 : i32 to vector<8x32xi32>
    %20 = arith.cmpi eq, %5, %19 : vector<8x32xi32>
    %21 = vector.broadcast %18 : i32 to vector<8x32xi32>
    %22 = arith.cmpi eq, %6, %21 : vector<8x32xi32>
    %23 = arith.andi %20, %22 : vector<8x32xi1>
    %cst_7 = arith.constant 1.000000e+00 : f32
    %24 = vector.broadcast %cst_7 : f32 to vector<8x32xf32>
    %25 = arith.select %23, %24, %16 : vector<8x32xi1>, vector<8x32xf32>
    %26 = arith.index_cast %arg0 : i32 to index
    %c2 = arith.constant 2 : index
    %27 = memref.load %arg1[%26, %c2] : memref<1x8xi32, #tpu.memory_space<smem>>
    %c2_i32 = arith.constant 2 : i32
    %28 = vector.broadcast %c2_i32 : i32 to vector<8x32xi32>
    %29 = arith.cmpi eq, %5, %28 : vector<8x32xi32>
    %30 = vector.broadcast %27 : i32 to vector<8x32xi32>
    %31 = arith.cmpi eq, %6, %30 : vector<8x32xi32>
    %32 = arith.andi %29, %31 : vector<8x32xi1>
    %cst_8 = arith.constant 1.000000e+00 : f32
    %33 = vector.broadcast %cst_8 : f32 to vector<8x32xf32>
    %34 = arith.select %32, %33, %25 : vector<8x32xi1>, vector<8x32xf32>
    %35 = arith.index_cast %arg0 : i32 to index
    %c3 = arith.constant 3 : index
    %36 = memref.load %arg1[%35, %c3] : memref<1x8xi32, #tpu.memory_space<smem>>
    %c3_i32 = arith.constant 3 : i32
    %37 = vector.broadcast %c3_i32 : i32 to vector<8x32xi32>
    %38 = arith.cmpi eq, %5, %37 : vector<8x32xi32>
    %39 = vector.broadcast %36 : i32 to vector<8x32xi32>
    %40 = arith.cmpi eq, %6, %39 : vector<8x32xi32>
    %41 = arith.andi %38, %40 : vector<8x32xi1>
    %cst_9 = arith.constant 1.000000e+00 : f32
    %42 = vector.broadcast %cst_9 : f32 to vector<8x32xf32>
    %43 = arith.select %41, %42, %34 : vector<8x32xi1>, vector<8x32xf32>
    %44 = arith.index_cast %arg0 : i32 to index
    %c4 = arith.constant 4 : index
    %45 = memref.load %arg1[%44, %c4] : memref<1x8xi32, #tpu.memory_space<smem>>
    %c4_i32 = arith.constant 4 : i32
    %46 = vector.broadcast %c4_i32 : i32 to vector<8x32xi32>
    %47 = arith.cmpi eq, %5, %46 : vector<8x32xi32>
    %48 = vector.broadcast %45 : i32 to vector<8x32xi32>
    %49 = arith.cmpi eq, %6, %48 : vector<8x32xi32>
    %50 = arith.andi %47, %49 : vector<8x32xi1>
    %cst_10 = arith.constant 1.000000e+00 : f32
    %51 = vector.broadcast %cst_10 : f32 to vector<8x32xf32>
    %52 = arith.select %50, %51, %43 : vector<8x32xi1>, vector<8x32xf32>
    %53 = arith.index_cast %arg0 : i32 to index
    %c5 = arith.constant 5 : index
    %54 = memref.load %arg1[%53, %c5] : memref<1x8xi32, #tpu.memory_space<smem>>
    %c5_i32 = arith.constant 5 : i32
    %55 = vector.broadcast %c5_i32 : i32 to vector<8x32xi32>
    %56 = arith.cmpi eq, %5, %55 : vector<8x32xi32>
    %57 = vector.broadcast %54 : i32 to vector<8x32xi32>
    %58 = arith.cmpi eq, %6, %57 : vector<8x32xi32>
    %59 = arith.andi %56, %58 : vector<8x32xi1>
    %cst_11 = arith.constant 1.000000e+00 : f32
    %60 = vector.broadcast %cst_11 : f32 to vector<8x32xf32>
    %61 = arith.select %59, %60, %52 : vector<8x32xi1>, vector<8x32xf32>
    %62 = arith.index_cast %arg0 : i32 to index
    %c6 = arith.constant 6 : index
    %63 = memref.load %arg1[%62, %c6] : memref<1x8xi32, #tpu.memory_space<smem>>
    %c6_i32 = arith.constant 6 : i32
    %64 = vector.broadcast %c6_i32 : i32 to vector<8x32xi32>
    %65 = arith.cmpi eq, %5, %64 : vector<8x32xi32>
    %66 = vector.broadcast %63 : i32 to vector<8x32xi32>
    %67 = arith.cmpi eq, %6, %66 : vector<8x32xi32>
    %68 = arith.andi %65, %67 : vector<8x32xi1>
    %cst_12 = arith.constant 1.000000e+00 : f32
    %69 = vector.broadcast %cst_12 : f32 to vector<8x32xf32>
    %70 = arith.select %68, %69, %61 : vector<8x32xi1>, vector<8x32xf32>
    %71 = arith.index_cast %arg0 : i32 to index
    %c7 = arith.constant 7 : index
    %72 = memref.load %arg1[%71, %c7] : memref<1x8xi32, #tpu.memory_space<smem>>
    %c7_i32 = arith.constant 7 : i32
    %73 = vector.broadcast %c7_i32 : i32 to vector<8x32xi32>
    %74 = arith.cmpi eq, %5, %73 : vector<8x32xi32>
    %75 = vector.broadcast %72 : i32 to vector<8x32xi32>
    %76 = arith.cmpi eq, %6, %75 : vector<8x32xi32>
    %77 = arith.andi %74, %76 : vector<8x32xi1>
    %cst_13 = arith.constant 1.000000e+00 : f32
    %78 = vector.broadcast %cst_13 : f32 to vector<8x32xf32>
    %79 = arith.select %77, %78, %70 : vector<8x32xi1>, vector<8x32xf32>
    %80 = arith.truncf %79 : vector<8x32xf32> to vector<8x32xbf16>
    %c0_14 = arith.constant 0 : index
    %c0_15 = arith.constant 0 : index
    %81 = vector.load %arg4[%c0_14, %c0_15] : memref<32x512xbf16, #tpu.memory_space<vmem>>, vector<32x512xbf16>
    %cst_16 = arith.constant dense<0.000000e+00> : vector<8x512xf32>
    %82 = tpu.matmul %80, %81, %cst_16 {dimension_numbers = #tpu.dot_dimension_numbers<[1], [0], [0], [1], [0, 0, 1, 1], [], []>} : vector<8x32xbf16>, vector<32x512xbf16>, vector<8x512xf32> -> vector<8x512xf32>
    %83 = arith.truncf %3 : vector<8x128xf32> to vector<8x128xbf16>
    %c0_17 = arith.constant 0 : index
    %c0_18 = arith.constant 0 : index
    %84 = vector.load %arg5[%c0_17, %c0_18] : memref<128x512xbf16, #tpu.memory_space<vmem>>, vector<128x512xbf16>
    %cst_19 = arith.constant dense<0.000000e+00> : vector<8x512xf32>
    %85 = tpu.matmul %83, %84, %cst_19 {dimension_numbers = #tpu.dot_dimension_numbers<[1], [0], [0], [1], [0, 0, 1, 1], [], []>} : vector<8x128xbf16>, vector<128x512xbf16>, vector<8x512xf32> -> vector<8x512xf32>
    %86 = arith.addf %82, %85 : vector<8x512xf32>
    %c0_20 = arith.constant 0 : index
    %c0_21 = arith.constant 0 : index
    %87 = vector.load %arg6[%c0_20, %c0_21] : memref<1x512xf32, #tpu.memory_space<vmem>>, vector<1x512xf32>
    %88 = vector.broadcast %87 : vector<1x512xf32> to vector<8x512xf32>
    %89 = arith.addf %86, %88 : vector<8x512xf32>
    %90 = vector.extract_strided_slice %89 {offsets = [0, 0], sizes = [8, 128], strides = [1, 1]} : vector<8x512xf32> to vector<8x128xf32>
    %91 = arith.negf %90 : vector<8x128xf32>
    %92 = math.exp %91 : vector<8x128xf32>
    %cst_22 = arith.constant 1.000000e+00 : f32
    %93 = vector.broadcast %cst_22 : f32 to vector<8x128xf32>
    %94 = arith.addf %93, %92 : vector<8x128xf32>
    %95 = arith.divf %93, %94 : vector<8x128xf32>
    %96 = vector.extract_strided_slice %89 {offsets = [0, 128], sizes = [8, 128], strides = [1, 1]} : vector<8x512xf32> to vector<8x128xf32>
    %97 = arith.negf %96 : vector<8x128xf32>
    %98 = math.exp %97 : vector<8x128xf32>
    %cst_23 = arith.constant 1.000000e+00 : f32
    %99 = vector.broadcast %cst_23 : f32 to vector<8x128xf32>
    %100 = arith.addf %99, %98 : vector<8x128xf32>
    %101 = arith.divf %99, %100 : vector<8x128xf32>
    %102 = vector.extract_strided_slice %89 {offsets = [0, 256], sizes = [8, 128], strides = [1, 1]} : vector<8x512xf32> to vector<8x128xf32>
    %103 = math.tanh %102 : vector<8x128xf32>
    %104 = vector.extract_strided_slice %89 {offsets = [0, 384], sizes = [8, 128], strides = [1, 1]} : vector<8x512xf32> to vector<8x128xf32>
    %105 = arith.negf %104 : vector<8x128xf32>
    %106 = math.exp %105 : vector<8x128xf32>
    %cst_24 = arith.constant 1.000000e+00 : f32
    %107 = vector.broadcast %cst_24 : f32 to vector<8x128xf32>
    %108 = arith.addf %107, %106 : vector<8x128xf32>
    %109 = arith.divf %107, %108 : vector<8x128xf32>
    %110 = arith.mulf %101, %4 : vector<8x128xf32>
    %111 = arith.mulf %95, %103 : vector<8x128xf32>
    %112 = arith.addf %110, %111 : vector<8x128xf32>
    %113 = math.tanh %112 : vector<8x128xf32>
    %114 = arith.mulf %109, %113 : vector<8x128xf32>
    %115 = arith.truncf %114 : vector<8x128xf32> to vector<8x128xbf16>
    %c0_25 = arith.constant 0 : index
    %c0_26 = arith.constant 0 : index
    %116 = vector.load %arg7[%c0_25, %c0_26] : memref<128x128xbf16, #tpu.memory_space<vmem>>, vector<128x128xbf16>
    %cst_27 = arith.constant dense<0.000000e+00> : vector<8x128xf32>
    %117 = tpu.matmul %115, %116, %cst_27 {dimension_numbers = #tpu.dot_dimension_numbers<[1], [0], [0], [1], [0, 0, 1, 1], [], []>} : vector<8x128xbf16>, vector<128x128xbf16>, vector<8x128xf32> -> vector<8x128xf32>
    %c0_28 = arith.constant 0 : index
    %c0_29 = arith.constant 0 : index
    %118 = vector.load %arg8[%c0_28, %c0_29] : memref<1x128xf32, #tpu.memory_space<vmem>>, vector<1x128xf32>
    %119 = vector.broadcast %118 : vector<1x128xf32> to vector<8x128xf32>
    %120 = arith.addf %117, %119 : vector<8x128xf32>
    %c0_30 = arith.constant 0 : index
    %c0_31 = arith.constant 0 : index
    %c0_32 = arith.constant 0 : index
    %121 = vector.load %arg9[%c0_30, %c0_31, %c0_32] : memref<1x8x128xf32, #tpu.memory_space<vmem>>, vector<1x8x128xf32>
    %122 = vector.shape_cast %121 : vector<1x8x128xf32> to vector<8x128xf32>
    %123 = vector.shape_cast %120 : vector<8x128xf32> to vector<1x8x128xf32>
    tpu.vector_store %arg9[%c0_30, %c0_31, %c0_32], %123 {strides = array<i32>} : memref<1x8x128xf32, #tpu.memory_space<vmem>>, vector<1x8x128xf32>,
    %c0_33 = arith.constant 0 : index
    %c0_34 = arith.constant 0 : index
    %124 = vector.load %arg10[%c0_33, %c0_34] : memref<8x128xf32, #tpu.memory_space<vmem>>, vector<8x128xf32>
    tpu.vector_store %arg10[%c0_33, %c0_34], %114 {strides = array<i32>} : memref<8x128xf32, #tpu.memory_space<vmem>>, vector<8x128xf32>,
    %c0_35 = arith.constant 0 : index
    %c0_36 = arith.constant 0 : index
    %125 = vector.load %arg11[%c0_35, %c0_36] : memref<8x128xf32, #tpu.memory_space<vmem>>, vector<8x128xf32>
    tpu.vector_store %arg11[%c0_35, %c0_36], %112 {strides = array<i32>} : memref<8x128xf32, #tpu.memory_space<vmem>>, vector<8x128xf32>,
    return
  }
  func.func @transform_0(%arg0: i32, %arg1: memref<1x8xi32, #tpu.memory_space<smem>>) -> (i32, i32) {
    %c0_i32 = arith.constant 0 : i32
    %c0_i32_0 = arith.constant 0 : i32
    %c0_i32_1 = arith.constant 0 : i32
    return %c0_i32, %c0_i32_0 : i32, i32
  }
  func.func @transform_1(%arg0: i32, %arg1: memref<1x8xi32, #tpu.memory_space<smem>>) -> (i32, i32) {
    %c0_i32 = arith.constant 0 : i32
    %c0_i32_0 = arith.constant 0 : i32
    %c0_i32_1 = arith.constant 0 : i32
    return %c0_i32, %c0_i32_0 : i32, i32
  }
  func.func @transform_2(%arg0: i32, %arg1: memref<1x8xi32, #tpu.memory_space<smem>>) -> (i32, i32) {
    %c0_i32 = arith.constant 0 : i32
    %c0_i32_0 = arith.constant 0 : i32
    %c0_i32_1 = arith.constant 0 : i32
    return %c0_i32, %c0_i32_0 : i32, i32
  }
  func.func @transform_3(%arg0: i32, %arg1: memref<1x8xi32, #tpu.memory_space<smem>>) -> (i32, i32) {
    %c0_i32 = arith.constant 0 : i32
    %c0_i32_0 = arith.constant 0 : i32
    %c0_i32_1 = arith.constant 0 : i32
    return %c0_i32, %c0_i32_0 : i32, i32
  }
  func.func @transform_4(%arg0: i32, %arg1: memref<1x8xi32, #tpu.memory_space<smem>>) -> (i32, i32) {
    %c0_i32 = arith.constant 0 : i32
    %c0_i32_0 = arith.constant 0 : i32
    %c0_i32_1 = arith.constant 0 : i32
    return %c0_i32, %c0_i32_0 : i32, i32
  }
  func.func @transform_5(%arg0: i32, %arg1: memref<1x8xi32, #tpu.memory_space<smem>>) -> (i32, i32) {
    %c0_i32 = arith.constant 0 : i32
    %c0_i32_0 = arith.constant 0 : i32
    %c0_i32_1 = arith.constant 0 : i32
    return %c0_i32, %c0_i32_0 : i32, i32
  }
  func.func @transform_6(%arg0: i32, %arg1: memref<1x8xi32, #tpu.memory_space<smem>>) -> (i32, i32) {
    %c0_i32 = arith.constant 0 : i32
    %c0_i32_0 = arith.constant 0 : i32
    %c0_i32_1 = arith.constant 0 : i32
    return %c0_i32, %c0_i32_0 : i32, i32
  }
  func.func @transform_7(%arg0: i32, %arg1: memref<1x8xi32, #tpu.memory_space<smem>>) -> (i32, i32, i32) {
    %c0_i32 = arith.constant 0 : i32
    %c0_i32_0 = arith.constant 0 : i32
    %c0_i32_1 = arith.constant 0 : i32
    return %arg0, %c0_i32, %c0_i32_0 : i32, i32, i32
  }
  func.func @transform_8(%arg0: i32, %arg1: memref<1x8xi32, #tpu.memory_space<smem>>) -> (i32, i32) {
    %c0_i32 = arith.constant 0 : i32
    %c0_i32_0 = arith.constant 0 : i32
    %c0_i32_1 = arith.constant 0 : i32
    return %c0_i32, %c0_i32_0 : i32, i32
  }
  func.func @transform_9(%arg0: i32, %arg1: memref<1x8xi32, #tpu.memory_space<smem>>) -> (i32, i32) {
    %c0_i32 = arith.constant 0 : i32
    %c0_i32_0 = arith.constant 0 : i32
    %c0_i32_1 = arith.constant 0 : i32
    return %c0_i32, %c0_i32_0 : i32, i32
  }
}

</mosaic_0001>

<bundles_post_ra>
// kernel: tpu_custom_call.1
= control target key start
LH: loop header
LB: loop body
LE: loop exit
PB: predicated region body
PF: predicated region fallthrough
CT: control target
= control target key end

     0   :  { %s1479_s0 = inlined_call_operand.hbm [shape: s32[1,8], index: 0, kind: input, shape index: {}]   ;;  %s1480_s1 = inlined_call_operand.hbm [shape: f32[8,128], index: 1, kind: input, shape index: {}]   ;;  %s1481_s2 = inlined_call_operand.hbm [shape: f32[8,128], index: 2, kind: input, shape index: {}]   ;;  %s1482_s3 = inlined_call_operand.hbm [shape: bf16[32,512], index: 3, kind: input, shape index: {}]   ;;  %s1483_s4 = inlined_call_operand.hbm [shape: bf16[128,512], index: 4, kind: input, shape index: {}]   ;;  %s1484_s5 = inlined_call_operand.vmem [shape: f32[1,512], index: 5, kind: input, shape index: {}]   ;;  %s1485_s6 = inlined_call_operand.hbm [shape: bf16[128,128], index: 6, kind: input, shape index: {}]   ;;  %s1486_s7 = inlined_call_operand.vmem [shape: f32[1,128], index: 7, kind: input, shape index: {}]   ;;  %s1487_s8 = inlined_call_operand.hbm [shape: f32[1,8,128], index: 8, kind: output, shape index: {0}]   ;;  %s1488_s9 = inlined_call_operand.hbm [shape: f32[8,128], index: 9, kind: output, shape index: {1}]   ;;  %s1489_s10 = inlined_call_operand.hbm [shape: f32[8,128], index: 10, kind: output, shape index: {2}]  }
   0x1   :  { %s980_s15 = scalar_lea.hbm %s1479_s0, 16 }
   0x2   :  { %p981_p0 = scmp.ne.s32.totalorder %s1479_s0, %s980_s15  ;;  %p984_p1 = scmp.lt.u32.totalorder %s980_s15, %s1479_s0 }
   0x4   :  { %p986_p2 = pnand %p984_p1, %p981_p0 }
   0x6   :  { %989 = shalt.err (!%p986_p2)  }
   0x7   :  { %s1178_s20 = smov [#allocation3]  }
   0x8   :  { %17 = dma.hbm_to_smem %s1479_s0, 16, %s1178_s20, [#allocation2] }
   0x9   :  { %1166 = dma.done.wait [#allocation2], 16 }
   0xa   :  { %1167 = vsyncadd [#allocation2], 4294967280 }
   0xb   :  { %19 = sfence }
   0xc   :  { %20 = vsyncpa [#allocation5], 0 }
   0xd   :  { %21 = vsyncpa [#allocation8], 0 }
   0xe   :  { %22 = vsyncpa [#allocation11], 0 }
   0xf   :  { %23 = vsyncpa [#allocation6], 0 }
  0x10   :  { %24 = vsyncpa [#allocation15], 0  ;;  %s1179_s23 = smov [#allocation7]   ;;  %s990_s27 = scalar_lea.hbm %s1481_s2, 128 }
  0x11   :  { %s41_s24 = sshll.u32 %s1179_s23, 4  ;;  %p991_p3 = scmp.ne.s32.totalorder %s1481_s2, %s990_s27  ;;  %s42_s24 = int_to_ptr.vmem [resolvable:$true] %s41_s24 }
  0x12   :  { %p994_p4 = scmp.lt.u32.totalorder %s990_s27, %s1481_s2 }
  0x14   :  { %p996_p5 = pnand %p994_p4, %p991_p3 }
  0x16   :  { %999 = shalt.err (!%p996_p5)
}
  0x17   :  { %s1000_s11 = scalar_lea.vmem %s42_s24, 128  ;;  %p1005_p7 = scmp.lt.s32.totalorder %s42_s24, %s42_s24 }
  0x18   :  { %p1001_p6 = scmp.ne.s32.totalorder %s42_s24, %s1000_s11  ;;  %p1006_p8 = scmp.lt.s32.totalorder %s1000_s11, %s1000_s11 }
  0x1a   :  { %p1007_p9 = por %p1006_p8, %p1005_p7 }
  0x1c   :  { %p1008_p10 = pnand %p1007_p9, %p1001_p6 }
  0x1e   :  { %1011 = shalt.err (!%p1008_p10)
}
  0x1f   :  { %44 = dma.hbm_to_vmem [thread:$0]  %s1481_s2, 128, %s42_s24, [#allocation8]  }
  0x20   :  { %s1180_s14 = smov [#allocation10]   ;;  %s1181_s16 = smov [#allocation4]  }
  0x21   :  { %s62_s15 = sshll.u32 %s1180_s14, 4  ;;  %s31_s17 = sshll.u32 %s1181_s16, 4  ;;  %s63_s15 = int_to_ptr.vmem [resolvable:$true] %s62_s15  ;;  %s32_s17 = int_to_ptr.vmem [resolvable:$true] %s31_s17 }
  0x22   :  { %s1012_s20 = scalar_lea.hbm %s1483_s4, 4096 }
  0x23   :  { %p1013_p11 = scmp.ne.s32.totalorder %s1483_s4, %s1012_s20  ;;  %p1016_p12 = scmp.lt.u32.totalorder %s1012_s20, %s1483_s4 }
  0x25   :  { %p1018_p13 = pnand %p1016_p12, %p1013_p11 }
  0x27   :  { %1021 = shalt.err (!%p1018_p13)
}
  0x28   :  { %s1022_s2 = scalar_lea.vmem %s63_s15, 4096  ;;  %p1027_p1 = scmp.lt.s32.totalorder %s63_s15, %s63_s15 }
  0x29   :  { %p1023_p0 = scmp.ne.s32.totalorder %s63_s15, %s1022_s2  ;;  %p1028_p2 = scmp.lt.s32.totalorder %s1022_s2, %s1022_s2 }
  0x2b   :  { %p1029_p3 = por %p1028_p2, %p1027_p1 }
  0x2d   :  { %p1030_p4 = pnand %p1029_p3, %p1023_p0 }
  0x2f   :  { %1033 = shalt.err (!%p1030_p4)
}
  0x30   :  { %s1182_s24 = smov 256   ;;  %s1183_s26 = smov 16  }
  0x31   :  { %68 = dma.hbm_to_vmem [thread:$0]  %s1483_s4, 4096, %s63_s15, [#allocation11], %s1182_s24, %s1182_s24, %s1183_s26  }
  0x32   :  { %s1034_s30 = scalar_lea.hbm %s1480_s1, 128 }
  0x33   :  { %p1035_p5 = scmp.ne.s32.totalorder %s1480_s1, %s1034_s30  ;;  %p1038_p6 = scmp.lt.u32.totalorder %s1034_s30, %s1480_s1 }
  0x35   :  { %p1040_p7 = pnand %p1038_p6, %p1035_p5 }
  0x37   :  { %1043 = shalt.err (!%p1040_p7)
}
  0x38   :  { %s1044_s16 = scalar_lea.vmem %s32_s17, 128  ;;  %p1049_p9 = scmp.lt.s32.totalorder %s32_s17, %s32_s17 }
  0x39   :  { %p1045_p8 = scmp.ne.s32.totalorder %s32_s17, %s1044_s16  ;;  %p1050_p10 = scmp.lt.s32.totalorder %s1044_s16, %s1044_s16 }
  0x3b   :  { %p1051_p11 = por %p1050_p10, %p1049_p9 }
  0x3d   :  { %p1052_p12 = pnand %p1051_p11, %p1045_p8 }
  0x3f   :  { %1055 = shalt.err (!%p1052_p12)
}
  0x40   :  { %34 = dma.hbm_to_vmem [thread:$0]  %s1480_s1, 128, %s32_s17, [#allocation5]  }
  0x41   :  { %s1184_s18 = smov [#allocation9]   ;;  %s1185_s20 = smov [#allocation12]  }
  0x42   :  { %s50_s19 = sshll.u32 %s1184_s18, 4  ;;  %s76_s21 = sshll.u32 %s1185_s20, 4  ;;  %s51_s19 = int_to_ptr.vmem [resolvable:$true] %s50_s19  ;;  %s77_s21 = int_to_ptr.vmem [resolvable:$true] %s76_s21 }
  0x43   :  { %s1056_s25 = scalar_lea.hbm %s1482_s3, 1024 }
  0x44   :  { %p1057_p13 = scmp.ne.s32.totalorder %s1482_s3, %s1056_s25  ;;  %p1060_p0 = scmp.lt.u32.totalorder %s1056_s25, %s1482_s3 }
  0x46   :  { %p1062_p1 = pnand %p1060_p0, %p1057_p13 }
  0x48   :  { %1065 = shalt.err (!%p1062_p1)
}
  0x49   :  { %s1066_s1 = scalar_lea.vmem %s51_s19, 1024  ;;  %p1071_p3 = scmp.lt.s32.totalorder %s51_s19, %s51_s19 }
  0x4a   :  { %p1067_p2 = scmp.ne.s32.totalorder %s51_s19, %s1066_s1  ;;  %p1072_p4 = scmp.lt.s32.totalorder %s1066_s1, %s1066_s1 }
  0x4c   :  { %p1073_p5 = por %p1072_p4, %p1071_p3 }
  0x4e   :  { %p1074_p6 = pnand %p1073_p5, %p1067_p2 }
  0x50   :  { %1077 = shalt.err (!%p1074_p6)
}
  0x51   :  { %56 = dma.hbm_to_vmem [thread:$0]  %s1482_s3, 1024, %s51_s19, [#allocation8], %s1182_s24, %s1182_s24, %s1183_s26  }
  0x52   :  { %s1078_s12 = scalar_lea.hbm %s1485_s6, 1024 }
  0x53   :  { %p1079_p7 = scmp.ne.s32.totalorder %s1485_s6, %s1078_s12  ;;  %p1082_p8 = scmp.lt.u32.totalorder %s1078_s12, %s1485_s6 }
  0x55   :  { %p1084_p9 = pnand %p1082_p8, %p1079_p7 }
  0x57   :  { %1087 = shalt.err (!%p1084_p9)
}
  0x58   :  { %s1088_s15 = scalar_lea.vmem %s77_s21, 1024  ;;  %p1093_p11 = scmp.lt.s32.totalorder %s77_s21, %s77_s21 }
  0x59   :  { %p1089_p10 = scmp.ne.s32.totalorder %s77_s21, %s1088_s15  ;;  %p1094_p12 = scmp.lt.s32.totalorder %s1088_s15, %s1088_s15 }
  0x5b   :  { %p1095_p13 = por %p1094_p12, %p1093_p11 }
  0x5d   :  { %p1096_p0 = pnand %p1095_p13, %p1089_p10 }
  0x5f   :  { %1099 = shalt.err (!%p1096_p0)
}
  0x60   :  { %s1186_s3 = smov 64   ;;  %s1187_s24 = smov 4  }
  0x61   :  { %82 = dma.hbm_to_vmem [thread:$0]  %s1485_s6, 1024, %s77_s21, [#allocation11], %s1186_s3, %s1186_s3, %s1187_s24  }
  0x62   :  { %1168 = dma.done.wait [#allocation5], 128  }
  0x63   :  { %1169 = vsyncadd [#allocation5], 4294967168 }
  0x64   :  { %1170 = dma.done.wait [#allocation8], 1152  }
  0x65   :  { %1171 = vsyncadd [#allocation8], 4294966144 }
  0x66   :  { %1172 = dma.done.wait [#allocation11], 5120  }
  0x67   :  { %1173 = vsyncadd [#allocation11], 4294962176  ;;  %v1188_v0 = vmov 0   ;;  %v896_v1 = vld [vmem:[#allocation10 + $0xc] ss:$16 sps:$4 sm:$0xff]   ;;  %s1329_s6 = sld [smem:[#allocation3]]  ;;  %v111_v17 = vlaneseq }
  0x68   :  { %446 = vmatprep.mubr.bf16.mxu1 %v1188_v0  ;;  %405 = vmatprep.mubr.bf16.mxu0 %v1188_v0  ;;  %v898_v2 = vld [vmem:[#allocation10 + $0x8] ss:$16 sps:$4 sm:$0xff]   ;;  %v899_v3 = vld [vmem:[#allocation10 + $0x2c] ss:$16 sps:$4 sm:$0xff]   ;;  %v902_v5 = vld [vmem:[#allocation10 + $0x4] ss:$16 sps:$4 sm:$0xff]  }
  0x69   :  { %414 = vmatprep.subr.bf16.mxu1 %v896_v1  ;;  %v901_v4 = vld [vmem:[#allocation10 + $0x28] ss:$16 sps:$4 sm:$0xff]   ;;  %v904_v6 = vld [vmem:[#allocation10] ss:$16 sps:$4 sm:$0xff]   ;;  %v905_v7 = vld [vmem:[#allocation10 + $0x4c] ss:$16 sps:$4 sm:$0xff]   ;;  %373 = vmatprep.subr.bf16.mxu0 %v902_v5 }
  0x6a   :  { %415 = vmatpush1.bf16.msra.mxu1 %v898_v2  ;;  %374 = vmatpush1.bf16.msra.mxu0 %v904_v6  ;;  %v908_v8 = vld [vmem:[#allocation10 + $0x24] ss:$16 sps:$4 sm:$0xff]   ;;  %v910_v9 = vld [vmem:[#allocation10 + $0x20] ss:$16 sps:$4 sm:$0xff]   ;;  %v907_v10 = vld [vmem:[#allocation10 + $0x48] ss:$16 sps:$4 sm:$0xff]  }
  0x6b   :  { %416 = vmatprep.subr.bf16.mxu1 %v899_v3  ;;  %v911_v11 = vld [vmem:[#allocation10 + $0x6c] ss:$16 sps:$4 sm:$0xff]   ;;  %375 = vmatprep.subr.bf16.mxu0 %v908_v8  ;;  %v914_v12 = vld [vmem:[#allocation10 + $0x44] ss:$16 sps:$4 sm:$0xff]   ;;  %v916_v13 = vld [vmem:[#allocation10 + $0x40] ss:$16 sps:$4 sm:$0xff]  }
  0x6c   :  { %s1331_s19 = sld [smem:[#allocation3 + $0x1]]  ;;  %v913_v14 = vld [vmem:[#allocation10 + $0x68] ss:$16 sps:$4 sm:$0xff]   ;;  %v920_v15 = vld [vmem:[#allocation10 + $0x64] ss:$16 sps:$4 sm:$0xff]   ;;  %s1333_s20 = sld [smem:[#allocation3 + $0x2]] }
  0x6d   :  { %v917_v16 = vld [vmem:[#allocation10 + $0x8c] ss:$16 sps:$4 sm:$0xff]   ;;  %s1335_s21 = sld [smem:[#allocation3 + $0x3]]  ;;  %s1337_s22 = sld [smem:[#allocation3 + $0x4]]  ;;  %v922_v18 = vld [vmem:[#allocation10 + $0x60] ss:$16 sps:$4 sm:$0xff]   ;;  %v118_v25 = vstv %s1329_s6 }
  0x6e   :  { %417 = vmatpush1.bf16.msra.mxu1 %v901_v4  ;;  %376 = vmatpush1.bf16.msra.mxu0 %v910_v9  ;;  %s1339_s23 = sld [smem:[#allocation3 + $0x5]]  ;;  %v919_v19 = vld [vmem:[#allocation10 + $0x88] ss:$16 sps:$4 sm:$0xff]   ;;  %v926_v20 = vld [vmem:[#allocation10 + $0x84] ss:$16 sps:$4 sm:$0xff]   ;;  %s1341_s25 = sld [smem:[#allocation3 + $0x6]] }
  0x6f   :  { %418 = vmatprep.subr.bf16.mxu1 %v905_v7  ;;  %377 = vmatprep.subr.bf16.mxu0 %v914_v12  ;;  %v923_v21 = vld [vmem:[#allocation10 + $0xac] ss:$16 sps:$4 sm:$0xff]   ;;  %v1343_v22 = vshrl.u32 %v111_v17, 7  ;;  %v1345_v23 = vand.u32 127, %v111_v17  ;;  %v928_v24 = vld [vmem:[#allocation10 + $0x80] ss:$16 sps:$4 sm:$0xff]  }
  0x70   :  { %s1348_s2 = sld [smem:[#allocation3 + $0x7]]  ;;  %v925_v26 = vld [vmem:[#allocation10 + $0xa8] ss:$16 sps:$4 sm:$0xff]   ;;  %v932_v27 = vld [vmem:[#allocation10 + $0xa4] ss:$16 sps:$4 sm:$0xff]   ;;  %v1189_v46 = vmov 0.0  }
  0x71   :  { %v929_v29 = vld [vmem:[#allocation10 + $0xcc] ss:$16 sps:$4 sm:$0xff]   ;;  %v931_v31 = vld [vmem:[#allocation10 + $0xc8] ss:$16 sps:$4 sm:$0xff]   ;;  %vm117_vm0 = vcmp.eq.s32.totalorder %v1343_v22, 0  ;;  %vm1354_vm1 = vcmp.eq.s32.totalorder %v1345_v23, %v118_v25  ;;  %vm124_vm2 = vcmp.eq.s32.totalorder %v1343_v22, 1 }
  0x72   :  { %419 = vmatpush1.bf16.msra.mxu1 %v907_v10  ;;  %378 = vmatpush1.bf16.msra.mxu0 %v916_v13  ;;  %v125_v28 = vstv %s1331_s19  ;;  %v132_v30 = vstv %s1333_s20  ;;  %v934_v34 = vld [vmem:[#allocation10 + $0xa0] ss:$16 sps:$4 sm:$0xff]   ;;  %v935_v35 = vld [vmem:[#allocation10 + $0xec] ss:$16 sps:$4 sm:$0xff]   ;;  %v938_v38 = vld [vmem:[#allocation10 + $0xc4] ss:$16 sps:$4 sm:$0xff]  }
  0x73   :  { %420 = vmatprep.subr.bf16.mxu1 %v911_v11  ;;  %379 = vmatprep.subr.bf16.mxu0 %v920_v15  ;;  %v139_v33 = vstv %s1335_s21  ;;  %vm1361_vm3 = vcmp.eq.s32.totalorder %v1345_v23, %v125_v28  ;;  %v146_v37 = vstv %s1337_s22  ;;  %vm131_vm4 = vcmp.eq.s32.totalorder %v1343_v22, 2  ;;  %v940_v41 = vld [vmem:[#allocation10 + $0xc0] ss:$16 sps:$4 sm:$0xff]   ;;  %vm120_vm6 = vmand %vm117_vm0, %vm1354_vm1  ;;  %v937_v44 = vld [vmem:[#allocation10 + $0xe8] ss:$16 sps:$4 sm:$0xff]  }
  0x74   :  { %vm1368_vm5 = vcmp.eq.s32.totalorder %v1345_v23, %v132_v30  ;;  %v153_v40 = vstv %s1339_s23  ;;  %vm138_vm7 = vcmp.eq.s32.totalorder %v1343_v22, 3  ;;  %vm1379_vm8 = vcmp.eq.s32.totalorder %v1345_v23, %v139_v33  ;;  %v105_v45 = vld [vmem:[#allocation4] sm:$0xff]  ;;  %vm127_vm9 = vmand %vm124_vm2, %vm1361_vm3  ;;  %v952_v2 = vld [vmem:[#allocation9 + $0xc] ss:$16 sps:$4 sm:$0xff]  }
  0x75   :  { %v160_v43 = vstv %s1341_s25  ;;  %v121_v47 = vsel %vm120_vm6, 1.0, %v1189_v46  ;;  %vm145_vm10 = vcmp.eq.s32.totalorder %v1343_v22, 4  ;;  %vm1391_vm11 = vcmp.eq.s32.totalorder %v1345_v23, %v146_v37  ;;  %v943_v49 = vld [vmem:[#allocation9 + $0x4] ss:$16 sps:$4 sm:$0xff]   ;;  %vm134_vm12 = vmand %vm131_vm4, %vm1368_vm5  ;;  %v946_v55 = vld [vmem:[#allocation10 + $0xe0] ss:$16 sps:$4 sm:$0xff]  }
  0x76   :  { %421 = vmatpush1.bf16.msra.mxu1 %v913_v14  ;;  %380 = vmatpush1.bf16.msra.mxu0 %v922_v18  ;;  %v128_v50 = vsel %vm127_vm9, 1.0, %v121_v47  ;;  %vm152_vm13 = vcmp.eq.s32.totalorder %v1343_v22, 5  ;;  %vm1401_vm14 = vcmp.eq.s32.totalorder %v1345_v23, %v153_v40  ;;  %v167_v52 = vstv %s1348_s2  ;;  %v944_v53 = vld [vmem:[#allocation10 + $0xe4] ss:$16 sps:$4 sm:$0xff]   ;;  %vm141_vm15 = vmand %vm138_vm7, %vm1379_vm8  ;;  %v941_v57 = vld [vmem:[#allocation9] ss:$16 sps:$4 sm:$0xff]  }
  0x77   :  { %422 = vmatprep.subr.bf16.mxu1 %v917_v16  ;;  %381 = vmatprep.subr.bf16.mxu0 %v926_v20  ;;  %v135_v54 = vsel %vm134_vm12, 1.0, %v128_v50  ;;  %vm159_vm0 = vcmp.eq.s32.totalorder %v1343_v22, 6  ;;  %vm161_vm1 = vcmp.eq.s32.totalorder %v1345_v23, %v160_v43  ;;  %vm148_vm2 = vmand %vm145_vm10, %vm1391_vm11  ;;  %vm166_vm4 = vcmp.eq.s32.totalorder %v1343_v22, 7  ;;  %v949_v61 = vld [vmem:[#allocation9 + $0x24] ss:$16 sps:$4 sm:$0xff]   ;;  %v957_v8 = vld [vmem:[#allocation12 + $0x8] sm:$0xff]  }
  0x78   :  { %v142_v56 = vsel %vm141_vm15, 1.0, %v135_v54  ;;  %vm155_vm3 = vmand %vm152_vm13, %vm1401_vm14  ;;  %vm168_vm5 = vcmp.eq.s32.totalorder %v1345_v23, %v167_v52  ;;  %v180_v59 = vpack.c.bf16 %v105_v45, %v105_v45  ;;  %v947_v63 = vld [vmem:[#allocation9 + $0x20] ss:$16 sps:$4 sm:$0xff]   ;;  %vm495_vm8 = vcmask 261120   ;;  %v950_v4 = vld [vmem:[#allocation9 + $0x8] ss:$16 sps:$4 sm:$0xff]  }
  0x79   :  { %v149_v58 = vsel %vm148_vm2, 1.0, %v142_v56  ;;  %vm162_vm6 = vmand %vm159_vm0, %vm161_vm1  ;;  %v955_v5 = vld [vmem:[#allocation9 + $0x2c] ss:$16 sps:$4 sm:$0xff]   ;;  %v953_v6 = vld [vmem:[#allocation9 + $0x28] ss:$16 sps:$4 sm:$0xff]   ;;  %vm1190_vm9 = vmmov 0  }
  0x7a   :  { %423 = vmatpush1.bf16.msra.mxu1 %v919_v19  ;;  %382 = vmatpush1.bf16.msra.mxu0 %v928_v24  ;;  %v156_v60 = vsel %vm155_vm3, 1.0, %v149_v58  ;;  %vm169_vm7 = vmand %vm166_vm4, %vm168_vm5  ;;  %v956_v7 = vld [vmem:[#allocation12] sm:$0xff]   ;;  %v958_v9 = vld [vmem:[#allocation12 + $0x10] sm:$0xff]   ;;  %v585_v19 = vsub.s32 0, %v1343_v22  ;;  %v589_v23 = vsub.s32 1, %v1343_v22  ;;  %v597_v36 = vsub.s32 3, %v1343_v22 }
  0x7b   :  { %424 = vmatprep.subr.bf16.mxu1 %v923_v21  ;;  %383 = vmatprep.subr.bf16.mxu0 %v932_v27  ;;  %v163_v62 = vsel %vm162_vm6, 1.0, %v156_v60  ;;  %v959_v10 = vld [vmem:[#allocation12 + $0x18] sm:$0xff]   ;;  %v961_v11 = vld [vmem:[#allocation12 + $0x28] sm:$0xff]   ;;  %v962_v12 = vld [vmem:[#allocation12 + $0x30] sm:$0xff]   ;;  %v593_v39 = vsub.s32 2, %v1343_v22 }
  0x7c   :  { %v170_v1 = vsel %vm169_vm7, 1.0, %v163_v62  ;;  %v963_v13 = vld [vmem:[#allocation12 + $0x38] sm:$0xff]   ;;  %v581_v21 = vld [vmem:[%s1484_s5] sm:$0xf]  ;;  %s1191_s5 = smov [#allocation14]  }
  0x7d   :  { %v171_v3 = vpack.c.bf16 %v170_v1, %v170_v1  ;;  %v590_v28 = vrot.slane %v581_v21, %v589_v23  ;;  %v107_v56 = vld [vmem:[#allocation7] sm:$0xff]  ;;  %s762_s29 = sshll.u32 %s1191_s5, 4  ;;  %s763_s29 = int_to_ptr.vmem [resolvable:$true] %s762_s29 }
  0x7e   :  { %425 = vmatpush1.bf16.msra.mxu1 %v925_v26  ;;  %384 = vmatpush1.bf16.msra.mxu0 %v934_v34  ;;  %v586_v26 = vrot.slane %v581_v21, %v585_v19  ;;  %s1100_s1 = scalar_lea.vmem %s763_s29, 128  ;;  %p1105_p2 = scmp.lt.s32.totalorder %s763_s29, %s763_s29 }
  0x7f   :  { %426 = vmatprep.subr.bf16.mxu1 %v929_v29  ;;  %385 = vmatprep.subr.bf16.mxu0 %v938_v38  ;;  %p1101_p1 = scmp.ne.s32.totalorder %s763_s29, %s1100_s1  ;;  %p1106_p3 = scmp.lt.s32.totalorder %s1100_s1, %s1100_s1 }
  0x81   :  { %p1107_p4 = por %p1106_p3, %p1105_p2 }
  0x82   :  { %427 = vmatpush1.bf16.msra.mxu1 %v931_v31  ;;  %386 = vmatpush1.bf16.msra.mxu0 %v940_v41  ;;  %v598_v41 = vrot.slane %v581_v21, %v597_v36 }
  0x83   :  { %428 = vmatprep.subr.bf16.mxu1 %v935_v35  ;;  %387 = vmatprep.subr.bf16.mxu0 %v944_v53  ;;  %p1108_p5 = pnand %p1107_p4, %p1101_p1 }
  0x86   :  { %429 = vmatpush1.bf16.msra.mxu1 %v937_v44  ;;  %388 = vmatpush1.bf16.msra.mxu0 %v946_v55 }
  0x87   :  { %499 = vmatprep.subr.bf16.mxu1 %v943_v49  ;;  %860 = vmatprep.subr.bf16.mxu0 %v1189_v46 }
  0x89   :  { %447 = vmatmul.mubr.bf16.vlgmr.msra.gmra.mrb[0].mxu1 %v180_v59  ;;  %406 = vmatmul.mubr.bf16.vlgmr.msra.gmra.mrb[0].mxu0 %v180_v59 }
  0x8a   :  { %500 = vmatpush1.bf16.msra.mxu1 %v941_v57  ;;  %531 = vmatprep.mubr.bf16.mxu1 %v1188_v0 }
  0x8b   :  { %501 = vmatprep.subr.bf16.mxu1 %v949_v61  ;;  %861 = vmatpush3.bf16.msra.mxu0 %v956_v7 }
  0x8c   :  { %862 = vmatprep.subr.bf16.mxu0 %v1189_v46  ;;  %876 = vmatprep.mubr.msk.bf16.mxu0 %vm1190_vm9, %v1189_v46 }
  0x8e   :  { %502 = vmatpush1.bf16.msra.mxu1 %v947_v63 }
  0x8f   :  { %540 = vmatprep.subr.bf16.mxu1 %v952_v2  ;;  %863 = vmatpush3.bf16.msra.mxu0 %v957_v8 }
  0x90   :  { %864 = vmatprep.subr.bf16.mxu0 %v1189_v46 }
  0x91   :  { %837 = vmatmul.mubr.msk.bf16.vlgmr.msra.gmra.mrb[4].mxu1 %vm495_vm8, %v171_v3 }
  0x92   :  { %541 = vmatpush1.bf16.msra.mxu1 %v950_v4  ;;  %572 = vmatprep.mubr.bf16.mxu1 %v1188_v0  ;;  %v960_v0 = vld [vmem:[#allocation12 + $0x20] sm:$0xff]  }
  0x93   :  { %542 = vmatprep.subr.bf16.mxu1 %v955_v5  ;;  %865 = vmatpush3.bf16.msra.mxu0 %v958_v9 }
  0x94   :  { %866 = vmatprep.subr.bf16.mxu0 %v1189_v46 }
  0x96   :  { %543 = vmatpush1.bf16.msra.mxu1 %v953_v6 }
  0x97   :  { %867 = vmatpush3.bf16.msra.mxu0 %v959_v10 }
  0x98   :  { %868 = vmatprep.subr.bf16.mxu0 %v1189_v46 }
  0x99   :  { %838 = vmatmul.mubr.msk.bf16.vlgmr.msra.gmra.mrb[8].mxu1 %vm495_vm8, %v171_v3 }
  0x9b   :  { %869 = vmatpush3.bf16.msra.mxu0 %v960_v0 }
  0x9c   :  { %870 = vmatprep.subr.bf16.mxu0 %v1189_v46 }
  0x9f   :  { %871 = vmatpush3.bf16.msra.mxu0 %v961_v11 }
  0xa0   :  { %872 = vmatprep.subr.bf16.mxu0 %v1189_v46 }
  0xa3   :  { %873 = vmatpush3.bf16.msra.mxu0 %v962_v12 }
  0xa4   :  { %874 = vmatprep.subr.bf16.mxu0 %v1189_v46  ;;  %v594_v46 = vrot.slane %v581_v21, %v593_v39 }
  0xa7   :  { %875 = vmatpush3.bf16.msra.mxu0 %v963_v13 }
 0x15c   :  { %v448_v14 = vpop.f32.mrb[0].mxu1  ;;  %v407_v18 = vpop.f32.mrb[0].mxu0 }
 0x15d   :  { %v450_v15 = vpop.f32.mrb[1].mxu1  ;;  %v409_v20 = vpop.f32.mrb[1].mxu0 }
 0x15e   :  { %v452_v16 = vpop.f32.mrb[2].mxu1  ;;  %v411_v24 = vpop.f32.mrb[2].mxu0 }
 0x15f   :  { %v453_v17 = vpop.f32.mrb[3].mxu1  ;;  %v412_v25 = vpop.f32.mrb[3].mxu0 }
 0x164   :  { %v533_v27 = vpop.f32.mrb[4].mxu1 }
 0x165   :  { %v534_v29 = vadd.f32 %v533_v27, %v407_v18  ;;  %v535_v30 = vpop.f32.mrb[5].mxu1 }
 0x166   :  { %v536_v31 = vadd.f32 %v535_v30, %v409_v20  ;;  %v537_v32 = vpop.f32.mrb[6].mxu1 }
 0x167   :  { %v603_v33 = vadd.f32 %v586_v26, %v534_v29  ;;  %v538_v34 = vpop.f32.mrb[7].mxu1 }
 0x168   :  { %v604_v35 = vadd.f32 %v590_v28, %v536_v31 }
 0x169   :  { %v839_v37 = vmul.f32 -1.442695, %v603_v33 }
 0x16a   :  { %v840_v38 = vmul.f32 -1.442695, %v604_v35 }
 0x16b   :  { %964 = vpow2.f32 %v839_v37 }
 0x16c   :  { %966 = vpow2.f32 %v840_v38  ;;  %v574_v40 = vpop.f32.mrb[8].mxu1 }
 0x16d   :  { %v575_v42 = vadd.f32 %v574_v40, %v448_v14  ;;  %v576_v43 = vpop.f32.mrb[9].mxu1 }
 0x16e   :  { %v577_v44 = vadd.f32 %v576_v43, %v450_v15  ;;  %v578_v45 = vpop.f32.mrb[10].mxu1 }
 0x16f   :  { %v579_v47 = vpop.f32.mrb[11].mxu1  ;;  %v605_v50 = vadd.f32 %v594_v46, %v575_v42 }
 0x170   :  { %v606_v48 = vadd.f32 %v598_v41, %v577_v44 }
 0x172   :  { %v841_v49 = vmul.f32 -1.442695, %v606_v48 }
 0x174   :  { %968 = vpow2.f32 %v841_v49 }
 0x175   :  { %v965_v51 = vpop.eup %964  ;;  %970 = vtanh.f32 %v605_v50 }
 0x176   :  { %v967_v52 = vpop.eup %966  ;;  %v610_v53 = vadd.f32 1.0, %v965_v51 }
 0x177   :  { %v616_v54 = vadd.f32 1.0, %v967_v52 }
 0x178   :  { %972 = vrcp.f32 %v610_v53 }
 0x179   :  { %974 = vrcp.f32 %v616_v54 }
 0x17e   :  { %v969_v22 = vpop.eup %968 }
 0x17f   :  { %v971_v55 = vpop.eup %970  ;;  %v623_v60 = vadd.f32 1.0, %v969_v22 }
 0x181   :  { %976 = vrcp.f32 %v623_v60 }
 0x182   :  { %v973_v57 = vpop.eup %972 }
 0x183   :  { %v975_v58 = vpop.eup %974  ;;  %v627_v59 = vmul.f32 %v973_v57, %v971_v55 }
 0x184   :  { %v626_v61 = vmul.f32 %v975_v58, %v107_v56 }
 0x186   :  { %v628_v62 = vadd.f32 %v627_v59, %v626_v61 }
 0x188   :  { %978 = vtanh.f32 %v628_v62  ;;  %745 = vst [vmem:[#allocation16] sm:$0xff] %v628_v62 }
 0x18b   :  { %v977_v63 = vpop.eup %976 }
 0x192   :  { %v979_v1 = vpop.eup %978 }
 0x193   :  { %v630_v2 = vmul.f32 %v979_v1, %v977_v63 }
 0x195   :  { %v631_v3 = vpack.c.bf16 %v630_v2, %v630_v2  ;;  %744 = vst [vmem:[#allocation14] sm:$0xff] %v630_v2 }
 0x197   :  { %877 = vmatmul.mubr.bf16.vlgmr.msra.gmra.mrb[4].mxu0 %v631_v3 }
 0x198   :  { %1111 = shalt.err (!%p1108_p5)
}
 0x199   :  { %s1112_s30 = scalar_lea.hbm %s1488_s9, 128 }
 0x19a   :  { %p1113_p6 = scmp.ne.s32.totalorder %s1488_s9, %s1112_s30  ;;  %p1116_p7 = scmp.lt.u32.totalorder %s1112_s30, %s1488_s9 }
 0x19c   :  { %p1118_p8 = pnand %p1116_p7, %p1113_p6 }
 0x19e   :  { %1121 = shalt.err (!%p1118_p8)
}
 0x19f   :  { %765 = dma.vmem_to_hbm [thread:$0]  %s763_s29, 128, %s1488_s9, [#allocation15]  }
 0x1a0   :  { %s1192_s15 = smov [#allocation16]  }
 0x1a1   :  { %s772_s3 = sshll.u32 %s1192_s15, 4  ;;  %s773_s3 = int_to_ptr.vmem [resolvable:$true] %s772_s3 }
 0x1a2   :  { %s1122_s24 = scalar_lea.vmem %s773_s3, 128  ;;  %p1127_p10 = scmp.lt.s32.totalorder %s773_s3, %s773_s3 }
 0x1a3   :  { %p1123_p9 = scmp.ne.s32.totalorder %s773_s3, %s1122_s24  ;;  %p1128_p11 = scmp.lt.s32.totalorder %s1122_s24, %s1122_s24 }
 0x1a5   :  { %p1129_p12 = por %p1128_p11, %p1127_p10 }
 0x1a7   :  { %p1130_p13 = pnand %p1129_p12, %p1123_p9 }
 0x1a9   :  { %1133 = shalt.err (!%p1130_p13)
}
 0x1aa   :  { %s1134_s6 = scalar_lea.hbm %s1489_s10, 128 }
 0x1ab   :  { %p1135_p0 = scmp.ne.s32.totalorder %s1489_s10, %s1134_s6  ;;  %p1138_p1 = scmp.lt.u32.totalorder %s1134_s6, %s1489_s10 }
 0x1ad   :  { %p1140_p2 = pnand %p1138_p1, %p1135_p0 }
 0x1af   :  { %1143 = shalt.err (!%p1140_p2)
}
 0x1b0   :  { %775 = dma.vmem_to_hbm [thread:$0]  %s773_s3, 128, %s1489_s10, [#allocation15]   ;;  %v842_v4 = vld [vmem:[%s1486_s7] ss:$0 sm:$0xff] }
 0x1b1   :  { %s1193_s27 = smov [#allocation13]  }
 0x1b2   :  { %s752_s28 = sshll.u32 %s1193_s27, 4  ;;  %s753_s28 = int_to_ptr.vmem [resolvable:$true] %s752_s28 }
 0x1b3   :  { %s1144_s5 = scalar_lea.vmem %s753_s28, 128  ;;  %p1149_p4 = scmp.lt.s32.totalorder %s753_s28, %s753_s28 }
 0x1b4   :  { %p1145_p3 = scmp.ne.s32.totalorder %s753_s28, %s1144_s5  ;;  %p1150_p5 = scmp.lt.s32.totalorder %s1144_s5, %s1144_s5 }
 0x1b6   :  { %p1151_p6 = por %p1150_p5, %p1149_p4 }
 0x1b8   :  { %p1152_p7 = pnand %p1151_p6, %p1145_p3 }
 0x26a   :  { %v737_v5 = vpop.f32.mrb[4].mxu0 }
 0x26b   :  { %v738_v6 = vadd.f32 %v842_v4, %v737_v5  ;;  %v878_v7 = vpop.f32.mrb[5].mxu0 }
 0x26c   :  { %v740_v8 = vpop.f32.mrb[6].mxu0 }
 0x26d   :  { %743 = vst [vmem:[#allocation13] sm:$0xff] %v738_v6  ;;  %v879_v9 = vpop.f32.mrb[7].mxu0 }
 0x26e   :  { %1155 = shalt.err (!%p1152_p7)
}
 0x26f   :  { %s1156_s7 = scalar_lea.hbm %s1487_s8, 128 }
 0x270   :  { %p1157_p8 = scmp.ne.s32.totalorder %s1487_s8, %s1156_s7  ;;  %p1160_p9 = scmp.lt.u32.totalorder %s1156_s7, %s1487_s8 }
 0x272   :  { %p1162_p10 = pnand %p1160_p9, %p1157_p8 }
 0x274   :  { %1165 = shalt.err (!%p1162_p10)
}
 0x275   :  { %755 = dma.vmem_to_hbm [thread:$0]  %s753_s28, 128, %s1487_s8, [#allocation6]  }
 0x276   :  { %1174 = dma.done.wait [#allocation6], 128  }
 0x277   :  { %1175 = vsyncadd [#allocation6], 4294967168 }
 0x278   :  { %1176 = dma.done.wait [#allocation15], 256  }
 0x279   :  { %1177 = vsyncadd [#allocation15], 4294967040 }
 0x27a   :  { %785 = vsyncpa [#allocation5], 1 }
 0x27b   :  { %786 = vsyncpa [#allocation8], 1 }
 0x27c   :  { %787 = vsyncpa [#allocation11], 1 }
 0x27d   :  { %788 = vsyncpa [#allocation6], 1 }
 0x27e   :  { %789 = vsyncpa [#allocation15], 1 }

</bundles_post_ra>
